<compile_context>
chip_gen: v7x
topology: tpu7x:2x2x1
jax: 0.10.0
libtpu: 0.0.40
codegen_flags: <defaults>
</compile_context>

<pallas_src>
import functools

import jax
import jax.numpy as jnp
from jax.experimental import pallas as pl
from jax.experimental.pallas import tpu as pltpu


def _round_up(x, m):
    return ((x + m - 1) // m) * m


def _spark_decoder_kernel(x_ref, w1_ref, b1_ref, w2_ref, b2_ref, w3_ref, b3_ref, o_ref):
    # Fused 3-layer MLP: bf16 matmuls on the MXU with f32 accumulation,
    # bias + ReLU on the VPU in f32, everything resident in VMEM.
    x = x_ref[...].astype(jnp.bfloat16)  # in-kernel cast (x arrives as f32)
    h1 = jnp.dot(x, w1_ref[...], preferred_element_type=jnp.float32) + b1_ref[...]
    h1 = jnp.maximum(h1, 0.0).astype(jnp.bfloat16)
    h2 = jnp.dot(h1, w2_ref[...], preferred_element_type=jnp.float32) + b2_ref[...]
    h2 = jnp.maximum(h2, 0.0).astype(jnp.bfloat16)
    out = jnp.dot(h2, w3_ref[...], preferred_element_type=jnp.float32) + b3_ref[...]
    o_ref[...] = out.astype(o_ref.dtype)


def prepare_params(params, num_points):
    """One-time conversion of f32 (in, out)-layout params to kernel form.

    Weights go to bf16; W3/b3 are zero-padded so the last matmul's N and the
    output stores are full 128-lane ops. Do this once (not per forward)."""
    w1, b1, w2, b2, w3, b3 = params
    out_dim = num_points * 3
    out_pad = _round_up(out_dim, 128)
    if out_pad != out_dim:
        w3 = jnp.pad(w3, ((0, 0), (0, out_pad - out_dim)))
        b3 = jnp.pad(b3, ((0, 0), (0, out_pad - out_dim)))
    return (
        w1.astype(jnp.bfloat16),
        b1.astype(jnp.float32),
        w2.astype(jnp.bfloat16),
        b2.astype(jnp.float32),
        w3.astype(jnp.bfloat16),
        b3.astype(jnp.float32),
    )


def spark_decoder_forward(x, prepared_params, num_points, *, block_b=None,
                          out_dtype=jnp.float32):
    """x: (B, 128) float32. Returns (B, num_points, 3) in out_dtype."""
    w1_bf, b1, w2_bf, b2, w3_bf, b3 = prepared_params
    B, D_in = x.shape
    assert D_in == 128
    out_dim = num_points * 3
    out_pad = w3_bf.shape[1]  # already padded to a multiple of 128

    if block_b is None:
        if B < 1024:
            # Single (or few) small tiles; MXU-aligned rows.
            block_b = _round_up(B, 8)
        else:
            # Keep >= 2 grid steps so both v7x TensorCores get work, cap at
            # 2048 rows so the per-step footprint (double-buffered x/out tiles
            # + f32 h1/h2 intermediates + resident weights, ~8 MiB) stays well
            # inside the 32 MiB default scoped VMEM on every generation.
            block_b = min(_round_up(pl.cdiv(B, 2), 256), 2048)
    grid = (pl.cdiv(B, block_b),)

    flops = 2 * B * (128 * 256 + 256 * 256 + 256 * out_pad)
    bytes_accessed = (
        x.size * 4
        + (w1_bf.size + w2_bf.size + w3_bf.size) * 2
        + (b1.size + b2.size + b3.size) * 4
        + B * out_pad * jnp.dtype(out_dtype).itemsize
    )

    out_flat = pl.pallas_call(
        _spark_decoder_kernel,
        out_shape=jax.ShapeDtypeStruct((B, out_pad), out_dtype),
        grid_spec=pl.GridSpec(
            grid=grid,
            in_specs=[
                pl.BlockSpec((block_b, D_in), lambda i: (i, 0)),   # x tile (f32)
                pl.BlockSpec((D_in, 256), lambda i: (0, 0)),       # W1 bf16
                pl.BlockSpec((1, 256), lambda i: (0, 0)),          # b1 f32
                pl.BlockSpec((256, 256), lambda i: (0, 0)),        # W2 bf16
                pl.BlockSpec((1, 256), lambda i: (0, 0)),          # b2 f32
                pl.BlockSpec((256, out_pad), lambda i: (0, 0)),    # W3 (padded) bf16
                pl.BlockSpec((1, out_pad), lambda i: (0, 0)),      # b3 (padded) f32
            ],
            out_specs=pl.BlockSpec((block_b, out_pad), lambda i: (i, 0)),
        ),
        compiler_params=pltpu.CompilerParams(
            dimension_semantics=("parallel",),
        ),
        cost_estimate=pl.CostEstimate(
            flops=flops, transcendentals=0, bytes_accessed=bytes_accessed
        ),
    )(x, w1_bf, b1, w2_bf, b2, w3_bf, b3)

    # Drop the zero-padded lanes before reshaping to points. Run the whole
    # forward under jit so this slice/reshape fuses into the same program
    # (or return the padded array and slice at the consumer).
    return out_flat[:, :out_dim].reshape(-1, num_points, 3)


def init_params(key, num_points):
    """Deterministic f32 parameter init matching the module's shapes.

    PyTorch Linear weight is (out, in); we store the transpose (in, out)."""
    out_dim = num_points * 3
    k1, k2, k3, k4, k5, k6 = jax.random.split(key, 6)

    def uniform(k, shape, fan_in):
        bound = 1.0 / jnp.sqrt(fan_in)
        return jax.random.uniform(k, shape, jnp.float32, -bound, bound)

    w1 = uniform(k1, (128, 256), 128.0)
    b1 = uniform(k2, (1, 256), 128.0)
    w2 = uniform(k3, (256, 256), 256.0)
    b2 = uniform(k4, (1, 256), 256.0)
    w3 = uniform(k5, (256, out_dim), 256.0)
    b3 = uniform(k6, (1, out_dim), 256.0)
    return (w1, b1, w2, b2, w3, b3)


def reference_forward(x, params, num_points):
    # Mirrors the kernel's numerics: bf16 matmul inputs, f32 accumulation.
    w1, b1, w2, b2, w3, b3 = params
    xb = x.astype(jnp.bfloat16)
    h1 = jnp.dot(xb, w1.astype(jnp.bfloat16), preferred_element_type=jnp.float32) + b1
    h1 = jnp.maximum(h1, 0.0)
    h2 = jnp.dot(h1.astype(jnp.bfloat16), w2.astype(jnp.bfloat16),
                 preferred_element_type=jnp.float32) + b2
    h2 = jnp.maximum(h2, 0.0)
    out = jnp.dot(h2.astype(jnp.bfloat16), w3.astype(jnp.bfloat16),
                  preferred_element_type=jnp.float32) + b3
    return out.reshape(-1, num_points, 3)


if __name__ == "__main__":
    num_points = 16
    B = 8

    key = jax.random.PRNGKey(0)
    kx, kp = jax.random.split(key)
    x = jax.random.normal(kx, (B, 128), dtype=jnp.float32)
    params = init_params(kp, num_points)

    # One-time weight prep (bf16 cast + lane padding), reused across calls.
    prepared = prepare_params(params, num_points)

    fwd = jax.jit(functools.partial(spark_decoder_forward,
                                    num_points=num_points))
    out = fwd(x, prepared)
    out = jax.block_until_ready(out)

    ref = reference_forward(x, params, num_points)
    assert out.shape == (B, num_points, 3), out.shape
    assert jnp.allclose(out, ref, atol=2e-3, rtol=2e-3), "mismatch vs reference"

    print("KERNEL_OK")
</pallas_src>

<mosaic_0001>
module attributes {stable_mosaic.version = 11 : i64} {
  func.func @_spark_decoder_kernel(%arg0: i32, %arg1: memref<8x128xf32, #tpu.memory_space<vmem>>, %arg2: memref<128x256xbf16, #tpu.memory_space<vmem>>, %arg3: memref<1x256xf32, #tpu.memory_space<vmem>>, %arg4: memref<256x256xbf16, #tpu.memory_space<vmem>>, %arg5: memref<1x256xf32, #tpu.memory_space<vmem>>, %arg6: memref<256x128xbf16, #tpu.memory_space<vmem>>, %arg7: memref<1x128xf32, #tpu.memory_space<vmem>>, %arg8: memref<8x128xf32, #tpu.memory_space<vmem>>) attributes {dimension_semantics = [#tpu.dimension_semantics<parallel>], iteration_bounds = array<i64: 1>, scalar_prefetch = 0 : i64, scratch_operands = 0 : i64, tpu.core_type = #tpu.core_type<tc>, window_params = [{transform_indices = @transform_0, window_bounds = array<i64: 8, 128>}, {pipeline_mode = #tpu.pipeline_mode<synchronous>, transform_indices = @transform_1, window_bounds = array<i64: 128, 256>}, {pipeline_mode = #tpu.pipeline_mode<synchronous>, transform_indices = @transform_2, window_bounds = array<i64: 1, 256>}, {pipeline_mode = #tpu.pipeline_mode<synchronous>, transform_indices = @transform_3, window_bounds = array<i64: 256, 256>}, {pipeline_mode = #tpu.pipeline_mode<synchronous>, transform_indices = @transform_4, window_bounds = array<i64: 1, 256>}, {pipeline_mode = #tpu.pipeline_mode<synchronous>, transform_indices = @transform_5, window_bounds = array<i64: 256, 128>}, {pipeline_mode = #tpu.pipeline_mode<synchronous>, transform_indices = @transform_6, window_bounds = array<i64: 1, 128>}, {transform_indices = @transform_7, window_bounds = array<i64: 8, 128>}]} {
    %c0 = arith.constant 0 : index
    %c0_0 = arith.constant 0 : index
    %0 = vector.load %arg1[%c0, %c0_0] : memref<8x128xf32, #tpu.memory_space<vmem>>, vector<8x128xf32>
    %1 = arith.truncf %0 : vector<8x128xf32> to vector<8x128xbf16>
    %c0_1 = arith.constant 0 : index
    %c0_2 = arith.constant 0 : index
    %2 = vector.load %arg2[%c0_1, %c0_2] : memref<128x256xbf16, #tpu.memory_space<vmem>>, vector<128x256xbf16>
    %cst = arith.constant dense<0.000000e+00> : vector<8x256xf32>
    %3 = tpu.matmul %1, %2, %cst {dimension_numbers = #tpu.dot_dimension_numbers<[1], [0], [0], [1], [0, 0, 1, 1], [], []>} : vector<8x128xbf16>, vector<128x256xbf16>, vector<8x256xf32> -> vector<8x256xf32>
    %c0_3 = arith.constant 0 : index
    %c0_4 = arith.constant 0 : index
    %4 = vector.load %arg3[%c0_3, %c0_4] : memref<1x256xf32, #tpu.memory_space<vmem>>, vector<1x256xf32>
    %5 = vector.broadcast %4 : vector<1x256xf32> to vector<8x256xf32>
    %6 = arith.addf %3, %5 : vector<8x256xf32>
    %cst_5 = arith.constant 0.000000e+00 : f32
    %7 = vector.broadcast %cst_5 : f32 to vector<8x256xf32>
    %8 = arith.maximumf %6, %7 : vector<8x256xf32>
    %9 = arith.truncf %8 : vector<8x256xf32> to vector<8x256xbf16>
    %c0_6 = arith.constant 0 : index
    %c0_7 = arith.constant 0 : index
    %10 = vector.load %arg4[%c0_6, %c0_7] : memref<256x256xbf16, #tpu.memory_space<vmem>>, vector<256x256xbf16>
    %cst_8 = arith.constant dense<0.000000e+00> : vector<8x256xf32>
    %11 = tpu.matmul %9, %10, %cst_8 {dimension_numbers = #tpu.dot_dimension_numbers<[1], [0], [0], [1], [0, 0, 1, 1], [], []>} : vector<8x256xbf16>, vector<256x256xbf16>, vector<8x256xf32> -> vector<8x256xf32>
    %c0_9 = arith.constant 0 : index
    %c0_10 = arith.constant 0 : index
    %12 = vector.load %arg5[%c0_9, %c0_10] : memref<1x256xf32, #tpu.memory_space<vmem>>, vector<1x256xf32>
    %13 = vector.broadcast %12 : vector<1x256xf32> to vector<8x256xf32>
    %14 = arith.addf %11, %13 : vector<8x256xf32>
    %cst_11 = arith.constant 0.000000e+00 : f32
    %15 = vector.broadcast %cst_11 : f32 to vector<8x256xf32>
    %16 = arith.maximumf %14, %15 : vector<8x256xf32>
    %17 = arith.truncf %16 : vector<8x256xf32> to vector<8x256xbf16>
    %c0_12 = arith.constant 0 : index
    %c0_13 = arith.constant 0 : index
    %18 = vector.load %arg6[%c0_12, %c0_13] : memref<256x128xbf16, #tpu.memory_space<vmem>>, vector<256x128xbf16>
    %cst_14 = arith.constant dense<0.000000e+00> : vector<8x128xf32>
    %19 = tpu.matmul %17, %18, %cst_14 {dimension_numbers = #tpu.dot_dimension_numbers<[1], [0], [0], [1], [0, 0, 1, 1], [], []>} : vector<8x256xbf16>, vector<256x128xbf16>, vector<8x128xf32> -> vector<8x128xf32>
    %c0_15 = arith.constant 0 : index
    %c0_16 = arith.constant 0 : index
    %20 = vector.load %arg7[%c0_15, %c0_16] : memref<1x128xf32, #tpu.memory_space<vmem>>, vector<1x128xf32>
    %21 = vector.broadcast %20 : vector<1x128xf32> to vector<8x128xf32>
    %22 = arith.addf %19, %21 : vector<8x128xf32>
    %c0_17 = arith.constant 0 : index
    %c0_18 = arith.constant 0 : index
    %23 = vector.load %arg8[%c0_17, %c0_18] : memref<8x128xf32, #tpu.memory_space<vmem>>, vector<8x128xf32>
    tpu.vector_store %arg8[%c0_17, %c0_18], %22 {strides = array<i32>} : memref<8x128xf32, #tpu.memory_space<vmem>>, vector<8x128xf32>,
    return
  }
  func.func @transform_0(%arg0: i32) -> (i32, i32) {
    %c0_i32 = arith.constant 0 : i32
    %c0_i32_0 = arith.constant 0 : i32
    return %arg0, %c0_i32 : i32, i32
  }
  func.func @transform_1(%arg0: i32) -> (i32, i32) {
    %c0_i32 = arith.constant 0 : i32
    %c0_i32_0 = arith.constant 0 : i32
    %c0_i32_1 = arith.constant 0 : i32
    return %c0_i32, %c0_i32_0 : i32, i32
  }
  func.func @transform_2(%arg0: i32) -> (i32, i32) {
    %c0_i32 = arith.constant 0 : i32
    %c0_i32_0 = arith.constant 0 : i32
    %c0_i32_1 = arith.constant 0 : i32
    return %c0_i32, %c0_i32_0 : i32, i32
  }
  func.func @transform_3(%arg0: i32) -> (i32, i32) {
    %c0_i32 = arith.constant 0 : i32
    %c0_i32_0 = arith.constant 0 : i32
    %c0_i32_1 = arith.constant 0 : i32
    return %c0_i32, %c0_i32_0 : i32, i32
  }
  func.func @transform_4(%arg0: i32) -> (i32, i32) {
    %c0_i32 = arith.constant 0 : i32
    %c0_i32_0 = arith.constant 0 : i32
    %c0_i32_1 = arith.constant 0 : i32
    return %c0_i32, %c0_i32_0 : i32, i32
  }
  func.func @transform_5(%arg0: i32) -> (i32, i32) {
    %c0_i32 = arith.constant 0 : i32
    %c0_i32_0 = arith.constant 0 : i32
    %c0_i32_1 = arith.constant 0 : i32
    return %c0_i32, %c0_i32_0 : i32, i32
  }
  func.func @transform_6(%arg0: i32) -> (i32, i32) {
    %c0_i32 = arith.constant 0 : i32
    %c0_i32_0 = arith.constant 0 : i32
    %c0_i32_1 = arith.constant 0 : i32
    return %c0_i32, %c0_i32_0 : i32, i32
  }
  func.func @transform_7(%arg0: i32) -> (i32, i32) {
    %c0_i32 = arith.constant 0 : i32
    %c0_i32_0 = arith.constant 0 : i32
    return %arg0, %c0_i32 : i32, i32
  }
}

</mosaic_0001>

<bundles_post_ra>
// kernel: spark_decoder_forward.1
= control target key start
LH: loop header
LB: loop body
LE: loop exit
PB: predicated region body
PF: predicated region fallthrough
CT: control target
= control target key end

     0   :  { %12 = vsyncpa [#allocation3], 0  ;;  %s1060_s0 = inlined_call_operand.hbm [shape: f32[8,128], index: 0, kind: input, shape index: {}]   ;;  %s1061_s1 = inlined_call_operand.hbm [shape: bf16[128,256], index: 1, kind: input, shape index: {}]   ;;  %s1062_s2 = inlined_call_operand.vmem [shape: f32[1,256], index: 2, kind: input, shape index: {}]   ;;  %s1063_s3 = inlined_call_operand.hbm [shape: bf16[256,256], index: 3, kind: input, shape index: {}]   ;;  %s1064_s4 = inlined_call_operand.vmem [shape: f32[1,256], index: 4, kind: input, shape index: {}]   ;;  %s1065_s5 = inlined_call_operand.hbm [shape: bf16[256,128], index: 5, kind: input, shape index: {}]   ;;  %s1066_s6 = inlined_call_operand.vmem [shape: f32[1,128], index: 6, kind: input, shape index: {}]   ;;  %s1067_s7 = inlined_call_operand.vmem [shape: f32[8,128], index: 7, kind: output, shape index: {}]  }
   0x1   :  { %13 = vsyncpa [#allocation5], 0 }
   0x2   :  { %14 = vsyncpa [#allocation8], 0  ;;  %s945_s24 = smov [#allocation4]   ;;  %s851_s28 = scalar_lea.hbm %s1061_s1, 2048 }
   0x3   :  { %s30_s25 = sshll.u32 %s945_s24, 4  ;;  %p852_p0 = scmp.ne.s32.totalorder %s1061_s1, %s851_s28  ;;  %s31_s25 = int_to_ptr.vmem [resolvable:$true] %s30_s25 }
   0x4   :  { %p855_p1 = scmp.lt.u32.totalorder %s851_s28, %s1061_s1 }
   0x6   :  { %p857_p2 = pnand %p855_p1, %p852_p0 }
   0x8   :  { %860 = shalt.err (!%p857_p2)
}
   0x9   :  { %s861_s10 = scalar_lea.vmem %s31_s25, 2048  ;;  %p866_p4 = scmp.lt.s32.totalorder %s31_s25, %s31_s25 }
   0xa   :  { %p862_p3 = scmp.ne.s32.totalorder %s31_s25, %s861_s10  ;;  %p867_p5 = scmp.lt.s32.totalorder %s861_s10, %s861_s10 }
   0xc   :  { %p868_p6 = por %p867_p5, %p866_p4 }
   0xe   :  { %p869_p7 = pnand %p868_p6, %p862_p3 }
  0x10   :  { %872 = shalt.err (!%p869_p7)
}
  0x11   :  { %s946_s11 = smov 128   ;;  %s947_s12 = smov 8  }
  0x12   :  { %36 = dma.hbm_to_vmem [thread:$0]  %s1061_s1, 2048, %s31_s25, [#allocation5], %s946_s11, %s946_s11, %s947_s12  }
  0x13   :  { %s948_s15 = smov [#allocation2]   ;;  %s949_s17 = smov [#allocation6]  }
  0x14   :  { %s21_s16 = sshll.u32 %s948_s15, 4  ;;  %s44_s18 = sshll.u32 %s949_s17, 4  ;;  %s22_s16 = int_to_ptr.vmem [resolvable:$true] %s21_s16  ;;  %s45_s18 = int_to_ptr.vmem [resolvable:$true] %s44_s18 }
  0x15   :  { %s873_s21 = scalar_lea.hbm %s1060_s0, 128 }
  0x16   :  { %p874_p8 = scmp.ne.s32.totalorder %s1060_s0, %s873_s21  ;;  %p877_p9 = scmp.lt.u32.totalorder %s873_s21, %s1060_s0 }
  0x18   :  { %p879_p10 = pnand %p877_p9, %p874_p8 }
  0x1a   :  { %882 = shalt.err (!%p879_p10)
}
  0x1b   :  { %s883_s1 = scalar_lea.vmem %s22_s16, 128  ;;  %p888_p12 = scmp.lt.s32.totalorder %s22_s16, %s22_s16 }
  0x1c   :  { %p884_p11 = scmp.ne.s32.totalorder %s22_s16, %s883_s1  ;;  %p889_p13 = scmp.lt.s32.totalorder %s883_s1, %s883_s1 }
  0x1e   :  { %p890_p0 = por %p889_p13, %p888_p12 }
  0x20   :  { %p891_p1 = pnand %p890_p0, %p884_p11 }
  0x22   :  { %894 = shalt.err (!%p891_p1)
}
  0x23   :  { %24 = dma.hbm_to_vmem [thread:$0]  %s1060_s0, 128, %s22_s16, [#allocation3]  }
  0x24   :  { %s895_s30 = scalar_lea.hbm %s1063_s3, 4096 }
  0x25   :  { %p896_p2 = scmp.ne.s32.totalorder %s1063_s3, %s895_s30  ;;  %p899_p3 = scmp.lt.u32.totalorder %s895_s30, %s1063_s3 }
  0x27   :  { %p901_p4 = pnand %p899_p3, %p896_p2 }
  0x29   :  { %904 = shalt.err (!%p901_p4)
}
  0x2a   :  { %s905_s14 = scalar_lea.vmem %s45_s18, 4096  ;;  %p910_p6 = scmp.lt.s32.totalorder %s45_s18, %s45_s18 }
  0x2b   :  { %p906_p5 = scmp.ne.s32.totalorder %s45_s18, %s905_s14  ;;  %p911_p7 = scmp.lt.s32.totalorder %s905_s14, %s905_s14 }
  0x2d   :  { %p912_p8 = por %p911_p7, %p910_p6 }
  0x2f   :  { %p913_p9 = pnand %p912_p8, %p906_p5 }
  0x31   :  { %916 = shalt.err (!%p913_p9)
}
  0x32   :  { %50 = dma.hbm_to_vmem [thread:$0]  %s1063_s3, 4096, %s45_s18, [#allocation5], %s946_s11, %s946_s11, %s947_s12  }
  0x33   :  { %s950_s16 = smov [#allocation7]   ;;  %s917_s21 = scalar_lea.hbm %s1065_s5, 2048 }
  0x34   :  { %s58_s17 = sshll.u32 %s950_s16, 4  ;;  %p918_p10 = scmp.ne.s32.totalorder %s1065_s5, %s917_s21  ;;  %s59_s17 = int_to_ptr.vmem [resolvable:$true] %s58_s17 }
  0x35   :  { %p921_p11 = scmp.lt.u32.totalorder %s917_s21, %s1065_s5 }
  0x37   :  { %p923_p12 = pnand %p921_p11, %p918_p10 }
  0x39   :  { %926 = shalt.err (!%p923_p12)
}
  0x3a   :  { %s927_s1 = scalar_lea.vmem %s59_s17, 2048  ;;  %p932_p0 = scmp.lt.s32.totalorder %s59_s17, %s59_s17 }
  0x3b   :  { %p928_p13 = scmp.ne.s32.totalorder %s59_s17, %s927_s1  ;;  %p933_p1 = scmp.lt.s32.totalorder %s927_s1, %s927_s1 }
  0x3d   :  { %p934_p2 = por %p933_p1, %p932_p0 }
  0x3f   :  { %p935_p3 = pnand %p934_p2, %p928_p13 }
  0x41   :  { %938 = shalt.err (!%p935_p3)
}
  0x42   :  { %s951_s3 = smov 64   ;;  %s952_s11 = smov 4  }
  0x43   :  { %64 = dma.hbm_to_vmem [thread:$0]  %s1065_s5, 2048, %s59_s17, [#allocation8], %s951_s3, %s951_s3, %s952_s11  }
  0x44   :  { %939 = dma.done.wait [#allocation3], 128  }
  0x45   :  { %940 = vsyncadd [#allocation3], 4294967168 }
  0x46   :  { %941 = dma.done.wait [#allocation5], 6144  }
  0x47   :  { %942 = vsyncadd [#allocation5], 4294961152 }
  0x48   :  { %943 = dma.done.wait [#allocation8], 2048  }
  0x49   :  { %944 = vsyncadd [#allocation8], 4294965248  ;;  %v953_v0 = vmov 0   ;;  %v763_v1 = vld [vmem:[#allocation4 + $0x4] ss:$8 sps:$4 sm:$0xff]   ;;  %v80_v26 = vld [vmem:[#allocation2] sm:$0xff]  ;;  %v100_v63 = vlaneseq }
  0x4a   :  { %222 = vmatprep.mubr.bf16.mxu0 %v953_v0  ;;  %v765_v2 = vld [vmem:[#allocation4] ss:$8 sps:$4 sm:$0xff]   ;;  %190 = vmatprep.subr.bf16.mxu0 %v763_v1  ;;  %v766_v3 = vld [vmem:[#allocation4 + $0x14] ss:$8 sps:$4 sm:$0xff]   ;;  %v768_v4 = vld [vmem:[#allocation4 + $0x10] ss:$8 sps:$4 sm:$0xff]   ;;  %v81_v31 = vpack.c.bf16 %v80_v26, %v80_v26 }
  0x4b   :  { %191 = vmatpush1.bf16.msra.mxu0 %v765_v2  ;;  %v769_v5 = vld [vmem:[#allocation4 + $0x24] ss:$8 sps:$4 sm:$0xff]   ;;  %v771_v6 = vld [vmem:[#allocation4 + $0x20] ss:$8 sps:$4 sm:$0xff]   ;;  %v772_v7 = vld [vmem:[#allocation4 + $0x34] ss:$8 sps:$4 sm:$0xff]  }
  0x4c   :  { %192 = vmatprep.subr.bf16.mxu0 %v766_v3  ;;  %v774_v8 = vld [vmem:[#allocation4 + $0x30] ss:$8 sps:$4 sm:$0xff]   ;;  %v775_v9 = vld [vmem:[#allocation4 + $0x44] ss:$8 sps:$4 sm:$0xff]   ;;  %v789_v11 = vld [vmem:[#allocation6] ss:$8 sps:$4 sm:$0xff]  }
  0x4d   :  { %v787_v10 = vld [vmem:[#allocation6 + $0x4] ss:$8 sps:$4 sm:$0xff]   ;;  %v790_v12 = vld [vmem:[#allocation6 + $0x14] ss:$8 sps:$4 sm:$0xff]   ;;  %v777_v13 = vld [vmem:[#allocation4 + $0x40] ss:$8 sps:$4 sm:$0xff]  }
  0x4e   :  { %439 = vmatprep.subr.bf16.mxu1 %v787_v10  ;;  %v792_v14 = vld [vmem:[#allocation6 + $0x10] ss:$8 sps:$4 sm:$0xff]   ;;  %v793_v15 = vld [vmem:[#allocation6 + $0x24] ss:$8 sps:$4 sm:$0xff]   ;;  %v778_v16 = vld [vmem:[#allocation4 + $0x54] ss:$8 sps:$4 sm:$0xff]  }
  0x4f   :  { %193 = vmatpush1.bf16.msra.mxu0 %v768_v4  ;;  %440 = vmatpush1.bf16.msra.mxu1 %v789_v11  ;;  %v780_v17 = vld [vmem:[#allocation4 + $0x50] ss:$8 sps:$4 sm:$0xff]   ;;  %v795_v18 = vld [vmem:[#allocation6 + $0x20] ss:$8 sps:$4 sm:$0xff]   ;;  %v796_v19 = vld [vmem:[#allocation6 + $0x34] ss:$8 sps:$4 sm:$0xff]  }
  0x50   :  { %194 = vmatprep.subr.bf16.mxu0 %v769_v5  ;;  %441 = vmatprep.subr.bf16.mxu1 %v790_v12  ;;  %v781_v20 = vld [vmem:[#allocation4 + $0x64] ss:$8 sps:$4 sm:$0xff]   ;;  %v783_v21 = vld [vmem:[#allocation4 + $0x60] ss:$8 sps:$4 sm:$0xff]   ;;  %v798_v22 = vld [vmem:[#allocation6 + $0x30] ss:$8 sps:$4 sm:$0xff]  }
  0x51   :  { %v799_v23 = vld [vmem:[#allocation6 + $0x44] ss:$8 sps:$4 sm:$0xff]   ;;  %v784_v24 = vld [vmem:[#allocation4 + $0x74] ss:$8 sps:$4 sm:$0xff]   ;;  %v786_v25 = vld [vmem:[#allocation4 + $0x70] ss:$8 sps:$4 sm:$0xff]  }
  0x52   :  { %v801_v27 = vld [vmem:[#allocation6 + $0x40] ss:$8 sps:$4 sm:$0xff]   ;;  %v802_v28 = vld [vmem:[#allocation6 + $0x54] ss:$8 sps:$4 sm:$0xff]   ;;  %v804_v29 = vld [vmem:[#allocation6 + $0x50] ss:$8 sps:$4 sm:$0xff]  }
  0x53   :  { %195 = vmatpush1.bf16.msra.mxu0 %v771_v6  ;;  %442 = vmatpush1.bf16.msra.mxu1 %v792_v14  ;;  %v805_v30 = vld [vmem:[#allocation6 + $0x64] ss:$8 sps:$4 sm:$0xff]   ;;  %v807_v32 = vld [vmem:[#allocation6 + $0x60] ss:$8 sps:$4 sm:$0xff]   ;;  %v808_v33 = vld [vmem:[#allocation6 + $0x74] ss:$8 sps:$4 sm:$0xff]  }
  0x54   :  { %196 = vmatprep.subr.bf16.mxu0 %v772_v7  ;;  %443 = vmatprep.subr.bf16.mxu1 %v793_v15  ;;  %v810_v34 = vld [vmem:[#allocation6 + $0x70] ss:$8 sps:$4 sm:$0xff]   ;;  %v811_v35 = vld [vmem:[#allocation6 + $0x84] ss:$8 sps:$4 sm:$0xff]   ;;  %v813_v36 = vld [vmem:[#allocation6 + $0x80] ss:$8 sps:$4 sm:$0xff]  }
  0x55   :  { %v814_v37 = vld [vmem:[#allocation6 + $0x94] ss:$8 sps:$4 sm:$0xff]   ;;  %v816_v38 = vld [vmem:[#allocation6 + $0x90] ss:$8 sps:$4 sm:$0xff]   ;;  %v817_v39 = vld [vmem:[#allocation6 + $0xa4] ss:$8 sps:$4 sm:$0xff]  }
  0x56   :  { %v819_v40 = vld [vmem:[#allocation6 + $0xa0] ss:$8 sps:$4 sm:$0xff]   ;;  %v820_v41 = vld [vmem:[#allocation6 + $0xb4] ss:$8 sps:$4 sm:$0xff]   ;;  %v822_v42 = vld [vmem:[#allocation6 + $0xb0] ss:$8 sps:$4 sm:$0xff]  }
  0x57   :  { %197 = vmatpush1.bf16.msra.mxu0 %v774_v8  ;;  %444 = vmatpush1.bf16.msra.mxu1 %v795_v18  ;;  %v823_v43 = vld [vmem:[#allocation6 + $0xc4] ss:$8 sps:$4 sm:$0xff]   ;;  %v825_v44 = vld [vmem:[#allocation6 + $0xc0] ss:$8 sps:$4 sm:$0xff]   ;;  %v826_v45 = vld [vmem:[#allocation6 + $0xd4] ss:$8 sps:$4 sm:$0xff]  }
  0x58   :  { %198 = vmatprep.subr.bf16.mxu0 %v775_v9  ;;  %445 = vmatprep.subr.bf16.mxu1 %v796_v19  ;;  %v828_v46 = vld [vmem:[#allocation6 + $0xd0] ss:$8 sps:$4 sm:$0xff]   ;;  %v829_v47 = vld [vmem:[#allocation6 + $0xe4] ss:$8 sps:$4 sm:$0xff]   ;;  %v831_v48 = vld [vmem:[#allocation6 + $0xe0] ss:$8 sps:$4 sm:$0xff]  }
  0x59   :  { %v832_v49 = vld [vmem:[#allocation6 + $0xf4] ss:$8 sps:$4 sm:$0xff]   ;;  %v834_v50 = vld [vmem:[#allocation6 + $0xf0] ss:$8 sps:$4 sm:$0xff]   ;;  %v835_v51 = vld [vmem:[#allocation7 + $0x40] sm:$0xff]   ;;  %v101_v0 = vshrl.u32 %v100_v63, 7 }
  0x5a   :  { %v836_v52 = vld [vmem:[#allocation7] sm:$0xff]   ;;  %v837_v53 = vld [vmem:[#allocation7 + $0x48] sm:$0xff]   ;;  %v839_v55 = vld [vmem:[#allocation7 + $0x50] sm:$0xff]  }
  0x5b   :  { %199 = vmatpush1.bf16.msra.mxu0 %v777_v13  ;;  %446 = vmatpush1.bf16.msra.mxu1 %v798_v22  ;;  %v838_v54 = vld [vmem:[#allocation7 + $0x8] sm:$0xff]   ;;  %v840_v56 = vld [vmem:[#allocation7 + $0x10] sm:$0xff]   ;;  %v841_v57 = vld [vmem:[#allocation7 + $0x58] sm:$0xff]   ;;  %v102_v1 = vsub.s32 0, %v101_v0  ;;  %v106_v3 = vsub.s32 1, %v101_v0 }
  0x5c   :  { %200 = vmatprep.subr.bf16.mxu0 %v778_v16  ;;  %447 = vmatprep.subr.bf16.mxu1 %v799_v23  ;;  %v842_v58 = vld [vmem:[#allocation7 + $0x18] sm:$0xff]   ;;  %v843_v59 = vld [vmem:[#allocation7 + $0x60] sm:$0xff]   ;;  %v845_v61 = vld [vmem:[#allocation7 + $0x68] sm:$0xff]  }
  0x5d   :  { %v844_v60 = vld [vmem:[#allocation7 + $0x20] sm:$0xff]   ;;  %v846_v62 = vld [vmem:[#allocation7 + $0x28] sm:$0xff]   ;;  %v98_v2 = vld [vmem:[%s1062_s2] sm:$0x3] }
  0x5e   :  { %v103_v4 = vrot.slane %v98_v2, %v102_v1  ;;  %v107_v5 = vrot.slane %v98_v2, %v106_v3  ;;  %v847_v16 = vld [vmem:[#allocation7 + $0x70] sm:$0xff]   ;;  %v849_v18 = vld [vmem:[#allocation7 + $0x78] sm:$0xff]  }
  0x5f   :  { %201 = vmatpush1.bf16.msra.mxu0 %v780_v17  ;;  %448 = vmatpush1.bf16.msra.mxu1 %v801_v27  ;;  %v848_v17 = vld [vmem:[#allocation7 + $0x30] sm:$0xff]   ;;  %v850_v19 = vld [vmem:[#allocation7 + $0x38] sm:$0xff]  }
  0x60   :  { %202 = vmatprep.subr.bf16.mxu0 %v781_v20  ;;  %449 = vmatprep.subr.bf16.mxu1 %v802_v28  ;;  %v267_v20 = vld [vmem:[%s1064_s4] sm:$0x3] }
  0x61   :  { %v276_v22 = vrot.slane %v267_v20, %v106_v3 }
  0x63   :  { %203 = vmatpush1.bf16.msra.mxu0 %v783_v21  ;;  %450 = vmatpush1.bf16.msra.mxu1 %v804_v29  ;;  %v272_v21 = vrot.slane %v267_v20, %v102_v1 }
  0x64   :  { %204 = vmatprep.subr.bf16.mxu0 %v784_v24  ;;  %451 = vmatprep.subr.bf16.mxu1 %v805_v30 }
  0x67   :  { %205 = vmatpush1.bf16.msra.mxu0 %v786_v25  ;;  %452 = vmatpush1.bf16.msra.mxu1 %v807_v32 }
  0x68   :  { %453 = vmatprep.subr.bf16.mxu1 %v808_v33  ;;  %732 = vmatprep.subr.bf16.mxu0 %v835_v51 }
  0x6a   :  { %223 = vmatmul.mubr.bf16.vlgmr.msra.gmra.mrb[0].mxu0 %v81_v31 }
  0x6b   :  { %454 = vmatpush1.bf16.msra.mxu1 %v810_v34  ;;  %733 = vmatpush3.bf16.msra.mxu0 %v836_v52  ;;  %v715_v34 = vld [vmem:[%s1066_s6] ss:$0 sm:$0xff] }
  0x6c   :  { %455 = vmatprep.subr.bf16.mxu1 %v811_v35  ;;  %734 = vmatprep.subr.bf16.mxu0 %v837_v53 }
  0x6f   :  { %456 = vmatpush1.bf16.msra.mxu1 %v813_v36  ;;  %735 = vmatpush3.bf16.msra.mxu0 %v838_v54 }
  0x70   :  { %457 = vmatprep.subr.bf16.mxu1 %v814_v37  ;;  %736 = vmatprep.subr.bf16.mxu0 %v839_v55 }
  0x73   :  { %458 = vmatpush1.bf16.msra.mxu1 %v816_v38  ;;  %737 = vmatpush3.bf16.msra.mxu0 %v840_v56 }
  0x74   :  { %459 = vmatprep.subr.bf16.mxu1 %v817_v39  ;;  %738 = vmatprep.subr.bf16.mxu0 %v841_v57 }
  0x77   :  { %460 = vmatpush1.bf16.msra.mxu1 %v819_v40  ;;  %739 = vmatpush3.bf16.msra.mxu0 %v842_v58 }
  0x78   :  { %461 = vmatprep.subr.bf16.mxu1 %v820_v41  ;;  %740 = vmatprep.subr.bf16.mxu0 %v843_v59 }
  0x7b   :  { %462 = vmatpush1.bf16.msra.mxu1 %v822_v42  ;;  %741 = vmatpush3.bf16.msra.mxu0 %v844_v60 }
  0x7c   :  { %463 = vmatprep.subr.bf16.mxu1 %v823_v43  ;;  %742 = vmatprep.subr.bf16.mxu0 %v845_v61 }
  0x7f   :  { %464 = vmatpush1.bf16.msra.mxu1 %v825_v44  ;;  %743 = vmatpush3.bf16.msra.mxu0 %v846_v62 }
  0x80   :  { %465 = vmatprep.subr.bf16.mxu1 %v826_v45  ;;  %744 = vmatprep.subr.bf16.mxu0 %v847_v16 }
  0x83   :  { %466 = vmatpush1.bf16.msra.mxu1 %v828_v46  ;;  %745 = vmatpush3.bf16.msra.mxu0 %v848_v17 }
  0x84   :  { %467 = vmatprep.subr.bf16.mxu1 %v829_v47  ;;  %746 = vmatprep.subr.bf16.mxu0 %v849_v18 }
  0x87   :  { %468 = vmatpush1.bf16.msra.mxu1 %v831_v48  ;;  %747 = vmatpush3.bf16.msra.mxu0 %v850_v19 }
  0x88   :  { %469 = vmatprep.subr.bf16.mxu1 %v832_v49 }
  0x8b   :  { %470 = vmatpush1.bf16.msra.mxu1 %v834_v50 }
 0x13d   :  { %v224_v6 = vpop.f32.mrb[0].mxu0 }
 0x13e   :  { %v225_v7 = vadd.f32 %v224_v6, %v103_v4  ;;  %v226_v8 = vpop.f32.mrb[1].mxu0 }
 0x13f   :  { %v227_v9 = vadd.f32 %v226_v8, %v107_v5  ;;  %v228_v10 = vpop.f32.mrb[2].mxu0 }
 0x140   :  { %v231_v11 = vmax.f32 %v225_v7, 0.0  ;;  %v229_v12 = vpop.f32.mrb[3].mxu0 }
 0x141   :  { %v232_v13 = vmax.f32 %v227_v9, 0.0 }
 0x142   :  { %v233_v15 = vpack.c.bf16 %v231_v11, %v231_v11 }
 0x143   :  { %v234_v14 = vpack.c.bf16 %v232_v13, %v232_v13 }
 0x145   :  { %471 = vmatprep.mubr.bf16.mxu1 %v234_v14 }
 0x146   :  { %472 = vmatmul.mubr.bf16.vlgmr.msra.gmra.mrb[0].mxu1 %v233_v15 }
 0x219   :  { %v473_v23 = vpop.f32.mrb[0].mxu1 }
 0x21a   :  { %v474_v24 = vadd.f32 %v473_v23, %v272_v21  ;;  %v475_v25 = vpop.f32.mrb[1].mxu1 }
 0x21b   :  { %v476_v26 = vadd.f32 %v475_v25, %v276_v22  ;;  %v477_v27 = vpop.f32.mrb[2].mxu1 }
 0x21c   :  { %v480_v28 = vmax.f32 %v474_v24, 0.0  ;;  %v478_v29 = vpop.f32.mrb[3].mxu1 }
 0x21d   :  { %v481_v30 = vmax.f32 %v476_v26, 0.0 }
 0x21e   :  { %v482_v32 = vpack.c.bf16 %v480_v28, %v480_v28 }
 0x21f   :  { %v483_v31 = vpack.c.bf16 %v481_v30, %v481_v30 }
 0x221   :  { %651 = vmatprep.mubr.bf16.mxu0 %v483_v31 }
 0x222   :  { %652 = vmatmul.mubr.bf16.vlgmr.msra.gmra.mrb[4].mxu0 %v482_v32 }
 0x2f5   :  { %v748_v33 = vpop.f32.mrb[4].mxu0 }
 0x2f6   :  { %v749_v35 = vpop.f32.mrb[5].mxu0 }
 0x2f7   :  { %v750_v36 = vadd.f32 %v749_v35, %v748_v33  ;;  %v751_v37 = vpop.f32.mrb[6].mxu0 }
 0x2f8   :  { %v752_v38 = vpop.f32.mrb[7].mxu0 }
 0x2f9   :  { %v654_v39 = vadd.f32 %v750_v36, %v715_v34 }
 0x2fb   :  { %659 = vst [vmem:[%s1067_s7] sm:$0xff] %v654_v39 }
 0x2fc   :  { %664 = vsyncpa [#allocation3], 1 }
 0x2fd   :  { %665 = vsyncpa [#allocation5], 1 }
 0x2fe   :  { %666 = vsyncpa [#allocation8], 1 }

</bundles_post_ra>
